<compile_context>
chip_gen: v5e
topology: v5e:2x2
jax: 0.10.0
libtpu: 0.0.40
codegen_flags: <defaults>
</compile_context>

<pallas_src>
import math
import functools

import jax
import jax.numpy as jnp
from jax import lax
from jax.experimental import pallas as pl
from jax.experimental.pallas import tpu as pltpu

_LANE = 128
_NEG_INF = -1e30


def _round_up(x, m):
    return ((x + m - 1) // m) * m


def _pick_tile(n_pad):
    for t in (512, 256, 128):
        if n_pad % t == 0:
            return t
    return 128


def _vmem_limit(nbytes):
    # Explicit scoped-VMEM budget with headroom, clamped so it fits every
    # generation (v7x has 64 MiB physical VMEM per TensorCore).
    return int(min(max(2 * nbytes, 16 * 1024 * 1024), 48 * 1024 * 1024))


# --------------------------------------------------------------------------
# kernel 1: GroupNorm statistics (per batch)
#           -> stats (B, 2, C_pad) = [rstd_c, -mean_c * rstd_c]
# --------------------------------------------------------------------------
def _gn_stats_kernel(x_ref, gmap_ref, gmapT_ref, stats_ref, ssum_ref, *,
                     inv_cnt, eps):
    n = pl.program_id(1)

    @pl.when(n == 0)
    def _():
        ssum_ref[...] = jnp.zeros(ssum_ref.shape, ssum_ref.dtype)

    xb = x_ref[0]                                          # (TN, C_pad) f32
    s1 = jnp.sum(xb, axis=0, keepdims=True)                # (1, C_pad)
    s2 = jnp.sum(xb * xb, axis=0, keepdims=True)           # (1, C_pad)
    ssum_ref[...] += jnp.concatenate([s1, s2], axis=0)     # (2, C_pad)

    @pl.when(n == pl.num_programs(1) - 1)
    def _():
        # fused group aggregation: one (2,C)@(C,G) and one (2,G)@(G,C) matmul
        g = jnp.dot(ssum_ref[...], gmapT_ref[...],
                    preferred_element_type=jnp.float32) * inv_cnt   # (2, G)
        mean_g = g[0:1, :]
        var_g = g[1:2, :] - mean_g * mean_g     # one-pass E[x^2] - mean^2
        rstd_g = lax.rsqrt(var_g + eps)
        shift_g = -mean_g * rstd_g
        st = jnp.concatenate([rstd_g, shift_g], axis=0)             # (2, G)
        stats_ref[0] = jnp.dot(st, gmap_ref[...],
                               preferred_element_type=jnp.float32)  # (2, C_pad)


# --------------------------------------------------------------------------
# kernel 2: normalize + to_qkv (1x1 conv) -> q, k, v in (B, N_pad, C_pad) bf16
#   gamma/beta and the q/k scale are already folded into wqkv / bqkv.
# --------------------------------------------------------------------------
def _norm_qkv_kernel(x_ref, stats_ref, wqkv_ref, bqkv_ref,
                     q_ref, k_ref, v_ref, *, c_pad):
    xb = x_ref[0]                                          # (TN, C_pad) f32
    st = stats_ref[0]                                      # (2, C_pad)
    z = xb * st[0:1, :] + st[1:2, :]                       # (x - mean) * rstd
    qkv = jnp.dot(z.astype(jnp.bfloat16), wqkv_ref[...],
                  preferred_element_type=jnp.float32) + bqkv_ref[...]
    q_ref[0] = qkv[:, 0:c_pad].astype(q_ref.dtype)
    k_ref[0] = qkv[:, c_pad:2 * c_pad].astype(k_ref.dtype)
    v_ref[0] = qkv[:, 2 * c_pad:3 * c_pad].astype(v_ref.dtype)


# --------------------------------------------------------------------------
# kernel 3: flash attention over spatial positions + proj (1x1) + residual
# --------------------------------------------------------------------------
def _attn_kernel(q_ref, k_ref, v_ref, xres_ref, wproj_ref, bproj_ref, o_ref,
                 m_ref, l_ref, acc_ref, *, n_valid, tk, mask_keys):
    ki = pl.program_id(2)

    @pl.when(ki == 0)
    def _():
        m_ref[...] = jnp.full(m_ref.shape, _NEG_INF, m_ref.dtype)
        l_ref[...] = jnp.zeros(l_ref.shape, l_ref.dtype)
        acc_ref[...] = jnp.zeros(acc_ref.shape, acc_ref.dtype)

    q = q_ref[0]                                           # (TQ, C_pad) bf16
    k = k_ref[0]                                           # (TK, C_pad) bf16
    v = v_ref[0]                                           # (TK, C_pad) bf16

    # s[i, j] = sum_c q[i, c] * k[j, c]   ('qc,kc->qk'), scale already folded in
    s = lax.dot_general(q, k, (((1,), (1,)), ((), ())),
                        preferred_element_type=jnp.float32)         # (TQ, TK)
    if mask_keys:
        # mask padded key columns (only emitted when N is not a multiple of 128)
        key_idx = ki * tk + lax.broadcasted_iota(jnp.int32, (1, tk), 1)
        s = jnp.where(key_idx < n_valid, s, _NEG_INF)

    m_prev = m_ref[...]                                             # (TQ, 1)
    m_new = jnp.maximum(m_prev, jnp.max(s, axis=-1, keepdims=True))
    alpha = jnp.exp(m_prev - m_new)
    p = jnp.exp(s - m_new)                                          # (TQ, TK)
    l_ref[...] = alpha * l_ref[...] + jnp.sum(p, axis=-1, keepdims=True)
    acc_ref[...] = alpha * acc_ref[...] + jnp.dot(
        p.astype(jnp.bfloat16), v, preferred_element_type=jnp.float32)
    m_ref[...] = m_new

    @pl.when(ki == pl.num_programs(2) - 1)
    def _():
        out = acc_ref[...] * pl.reciprocal(l_ref[...], approx=True)  # (TQ, C_pad)
        res = jnp.dot(out.astype(jnp.bfloat16), wproj_ref[...],
                      preferred_element_type=jnp.float32)
        o_ref[0] = res + bproj_ref[...] + xres_ref[0]


# --------------------------------------------------------------------------
# wrapper
# --------------------------------------------------------------------------
def attention_block(x_nchw, gamma, beta, wqkv, bqkv, wproj, bproj, *, groups=32):
    B, C, H, W = x_nchw.shape
    assert C % groups == 0
    N = H * W
    cpg = C // groups
    scale = math.pow(C, -0.25)
    eps = 1e-6

    f32, bf16 = jnp.float32, jnp.bfloat16
    C_pad = _round_up(C, _LANE)
    N_pad = _round_up(N, _LANE)
    tile_n = _pick_tile(N_pad)
    TQ = TK = tile_n
    nn = N_pad // tile_n
    nq = N_pad // TQ
    nk = N_pad // TK

    # ---- x: NCHW -> (B, N, C) f32, zero-pad spatial and channel axes -------
    x = jnp.transpose(x_nchw.reshape(B, C, N), (0, 2, 1)).astype(f32)
    x = jnp.pad(x, ((0, 0), (0, N_pad - N), (0, C_pad - C)))

    # ---- parameters: pad + transpose to MXU-natural (in, out) layout -------
    def pad_vec(v_, n_to):                      # (n,) -> (1, n_to)
        return jnp.pad(v_.astype(f32), (0, n_to - v_.shape[0])).reshape(1, n_to)

    def pad_wT(w):                              # (C_out, C_in) -> (C_pad, C_pad) in,out
        return jnp.pad(w.astype(f32).T, ((0, C_pad - C), (0, C_pad - C)))

    gamma_col = jnp.pad(gamma.astype(f32), (0, C_pad - C)).reshape(C_pad, 1)
    beta_row = pad_vec(beta, C_pad)

    # fold the q/k scale into to_qkv weights + biases (removes 2x (N,C) VPU muls)
    wq = pad_wT(wqkv[0:C] * scale)
    wk = pad_wT(wqkv[C:2 * C] * scale)
    wv = pad_wT(wqkv[2 * C:3 * C])
    w_t = jnp.concatenate([wq, wk, wv], axis=1)                    # (C_pad, 3*C_pad)
    b_t = jnp.concatenate(
        [pad_vec(bqkv[0:C] * scale, C_pad),
         pad_vec(bqkv[C:2 * C] * scale, C_pad),
         pad_vec(bqkv[2 * C:3 * C], C_pad)], axis=1)               # (1, 3*C_pad)

    # fold GroupNorm gamma/beta into the qkv weights + bias:
    #   ((z*gamma + beta) @ W + b) == z @ (gamma*W) + (beta @ W + b)
    wqkv_t = (gamma_col * w_t).astype(bf16)                        # (C_pad, 3*C_pad)
    bqkv_p = b_t + jnp.dot(beta_row, w_t)                          # (1, 3*C_pad)

    wproj_t = pad_wT(wproj).astype(bf16)                           # (C_pad, C_pad)
    bproj_p = pad_vec(bproj, C_pad)

    # one-hot group membership (zero columns for padded channels)
    c_idx = jnp.arange(C_pad)
    gmap = ((c_idx[None, :] // cpg == jnp.arange(groups)[:, None])
            & (c_idx[None, :] < C)).astype(f32)                    # (G, C_pad)
    gmapT = gmap.T                                                 # (C_pad, G)

    inv_cnt = 1.0 / float(cpg * N)

    # ---------------- kernel 1: GroupNorm statistics ------------------------
    stats = pl.pallas_call(
        functools.partial(_gn_stats_kernel, inv_cnt=inv_cnt, eps=eps),
        out_shape=jax.ShapeDtypeStruct((B, 2, C_pad), f32),
        grid_spec=pltpu.PrefetchScalarGridSpec(
            num_scalar_prefetch=0,
            grid=(B, nn),
            in_specs=[
                pl.BlockSpec((1, tile_n, C_pad), lambda b, n: (b, n, 0)),
                pl.BlockSpec((groups, C_pad), lambda b, n: (0, 0)),
                pl.BlockSpec((C_pad, groups), lambda b, n: (0, 0)),
            ],
            out_specs=pl.BlockSpec((1, 2, C_pad), lambda b, n: (b, 0, 0)),
            scratch_shapes=[pltpu.VMEM((2, C_pad), f32)],
        ),
        compiler_params=pltpu.CompilerParams(
            dimension_semantics=("parallel", "arbitrary"),
            vmem_limit_bytes=_vmem_limit(
                2 * tile_n * C_pad * 4 + 4 * C_pad * groups * 4 + 4 * 2 * C_pad * 4)),
    )(x, gmap, gmapT)

    # ---------------- kernel 2: normalize + to_qkv --------------------------
    q, k, v = pl.pallas_call(
        functools.partial(_norm_qkv_kernel, c_pad=C_pad),
        out_shape=tuple(jax.ShapeDtypeStruct((B, N_pad, C_pad), bf16)
                        for _ in range(3)),
        grid_spec=pltpu.PrefetchScalarGridSpec(
            num_scalar_prefetch=0,
            grid=(B, nn),
            in_specs=[
                pl.BlockSpec((1, tile_n, C_pad), lambda b, n: (b, n, 0)),   # x
                pl.BlockSpec((1, 2, C_pad), lambda b, n: (b, 0, 0)),        # stats
                pl.BlockSpec((C_pad, 3 * C_pad), lambda b, n: (0, 0)),      # Wqkv^T
                pl.BlockSpec((1, 3 * C_pad), lambda b, n: (0, 0)),          # bqkv
            ],
            out_specs=tuple(
                pl.BlockSpec((1, tile_n, C_pad), lambda b, n: (b, n, 0))
                for _ in range(3)),
        ),
        compiler_params=pltpu.CompilerParams(
            dimension_semantics=("parallel", "parallel"),
            vmem_limit_bytes=_vmem_limit(
                2 * tile_n * C_pad * 4
                + 3 * 2 * tile_n * C_pad * 2
                + 2 * C_pad * 3 * C_pad * 2
                + 4 * tile_n * 3 * C_pad * 4)),
    )(x, stats, wqkv_t, bqkv_p)

    # ---------------- kernel 3: flash attention + proj + residual -----------
    out = pl.pallas_call(
        functools.partial(_attn_kernel, n_valid=N, tk=TK,
                          mask_keys=(N_pad != N)),
        out_shape=jax.ShapeDtypeStruct((B, N_pad, C_pad), f32),
        grid_spec=pltpu.PrefetchScalarGridSpec(
            num_scalar_prefetch=0,
            grid=(B, nq, nk),
            in_specs=[
                pl.BlockSpec((1, TQ, C_pad), lambda b, qi, ki: (b, qi, 0)),  # q
                pl.BlockSpec((1, TK, C_pad), lambda b, qi, ki: (b, ki, 0)),  # k
                pl.BlockSpec((1, TK, C_pad), lambda b, qi, ki: (b, ki, 0)),  # v
                pl.BlockSpec((1, TQ, C_pad), lambda b, qi, ki: (b, qi, 0)),  # residual
                pl.BlockSpec((C_pad, C_pad), lambda b, qi, ki: (0, 0)),      # Wproj^T
                pl.BlockSpec((1, C_pad), lambda b, qi, ki: (0, 0)),          # bproj
            ],
            out_specs=pl.BlockSpec((1, TQ, C_pad), lambda b, qi, ki: (b, qi, 0)),
            scratch_shapes=[
                pltpu.VMEM((TQ, 1), f32),        # running max
                pltpu.VMEM((TQ, 1), f32),        # running denominator
                pltpu.VMEM((TQ, C_pad), f32),    # output accumulator
            ],
        ),
        compiler_params=pltpu.CompilerParams(
            dimension_semantics=("parallel", "parallel", "arbitrary"),
            vmem_limit_bytes=_vmem_limit(
                2 * 3 * TK * C_pad * 2
                + 2 * TQ * C_pad * 4 * 2
                + 2 * C_pad * C_pad * 2
                + TQ * C_pad * 4
                + 4 * TQ * TK * 4)),
    )(q, k, v, x, wproj_t, bproj_p)

    out = out[:, :N, :C]                            # drop spatial/channel padding
    return jnp.transpose(out, (0, 2, 1)).reshape(B, C, H, W)


# --------------------------------------------------------------------------
# pure-JAX reference (f32, matches the PyTorch module semantics)
# --------------------------------------------------------------------------
def reference(x, gamma, beta, wqkv, bqkv, wproj, bproj, *, groups=32):
    B, C, H, W = x.shape
    N = H * W
    scale = math.pow(C, -0.25)
    xf = x.reshape(B, C, N)
    xg = xf.reshape(B, groups, (C // groups) * N)
    mean = xg.mean(-1, keepdims=True)
    var = ((xg - mean) ** 2).mean(-1, keepdims=True)
    xn = (xg - mean) / jnp.sqrt(var + 1e-6)
    xn = xn.reshape(B, C, N) * gamma.reshape(1, C, 1) + beta.reshape(1, C, 1)
    qkv = jnp.einsum('oc,bcn->bon', wqkv, xn) + bqkv.reshape(1, 3 * C, 1)
    q, k, v = qkv[:, :C], qkv[:, C:2 * C], qkv[:, 2 * C:]
    attn = jnp.einsum('bci,bcj->bij', q * scale, k * scale)
    attn = jax.nn.softmax(attn, axis=-1)
    out = jnp.einsum('bij,bcj->bci', attn, v)
    out = jnp.einsum('oc,bcn->bon', wproj, out) + bproj.reshape(1, C, 1)
    return out.reshape(B, C, H, W) + x


if __name__ == "__main__":
    B, C, H, W = 2, 64, 8, 8       # dim must be divisible by 32 (GroupNorm groups)
    key = jax.random.PRNGKey(0)
    kx, kq, kbq, kp, kbp = jax.random.split(key, 5)

    x = jax.random.normal(kx, (B, C, H, W), dtype=jnp.float32)

    gamma = jnp.ones((C,), jnp.float32)          # GroupNorm affine init
    beta = jnp.zeros((C,), jnp.float32)
    wqkv = 0.1 * jax.random.normal(kq, (3 * C, C), dtype=jnp.float32)
    bqkv = 0.1 * jax.random.normal(kbq, (3 * C,), dtype=jnp.float32)
    # NOTE: the module zero-inits proj.weight; small random values are used so
    # the attention hot path is numerically exercised (forward semantics are
    # identical for any weight values).
    wproj = 0.1 * jax.random.normal(kp, (C, C), dtype=jnp.float32)
    bproj = 0.1 * jax.random.normal(kbp, (C,), dtype=jnp.float32)

    y = attention_block(x, gamma, beta, wqkv, bqkv, wproj, bproj)
    y = jax.block_until_ready(y)

    y_ref = reference(x, gamma, beta, wqkv, bqkv, wproj, bproj)
    assert y.shape == (B, C, H, W)
    # matmuls use bf16 MXU inputs with f32 accumulation -> bf16-level tolerance
    err = float(jnp.max(jnp.abs(y - y_ref)))
    assert jnp.allclose(y, y_ref, rtol=2e-2, atol=2e-2), f"mismatch, max abs err={err}"

    print("KERNEL_OK")
</pallas_src>

<mosaic_0001>
module attributes {stable_mosaic.version = 11 : i64} {
  func.func @_gn_stats_kernel(%arg0: i32, %arg1: i32, %arg2: memref<1x128x128xf32, #tpu.memory_space<vmem>>, %arg3: memref<32x128xf32, #tpu.memory_space<vmem>>, %arg4: memref<128x32xf32, #tpu.memory_space<vmem>>, %arg5: memref<1x2x128xf32, #tpu.memory_space<vmem>>, %arg6: memref<2x128xf32, #tpu.memory_space<vmem>>) attributes {dimension_semantics = [#tpu.dimension_semantics<parallel>, #tpu.dimension_semantics<arbitrary>], iteration_bounds = array<i64: 2, 1>, scalar_prefetch = 0 : i64, scratch_operands = 1 : i64, tpu.core_type = #tpu.core_type<tc>, window_params = [{transform_indices = @transform_0, window_bounds = array<i64: 1, 128, 128>}, {pipeline_mode = #tpu.pipeline_mode<synchronous>, transform_indices = @transform_1, window_bounds = array<i64: 32, 128>}, {pipeline_mode = #tpu.pipeline_mode<synchronous>, transform_indices = @transform_2, window_bounds = array<i64: 128, 32>}, {transform_indices = @transform_3, window_bounds = array<i64: 1, 2, 128>}]} {
    %c0_i32 = arith.constant 0 : i32
    %0 = arith.cmpi eq, %arg1, %c0_i32 : i32
    %1 = arith.extui %0 : i1 to i32
    %c0_i32_0 = arith.constant 0 : i32
    %2 = arith.cmpi ne, %1, %c0_i32_0 : i32
    scf.if %2 {
      %cst_10 = arith.constant 0.000000e+00 : f32
      %17 = vector.broadcast %cst_10 : f32 to vector<2x128xf32>
      %c0_11 = arith.constant 0 : index
      %c0_12 = arith.constant 0 : index
      %18 = vector.load %arg6[%c0_11, %c0_12] : memref<2x128xf32, #tpu.memory_space<vmem>>, vector<2x128xf32>
      tpu.vector_store %arg6[%c0_11, %c0_12], %17 {strides = array<i32>} : memref<2x128xf32, #tpu.memory_space<vmem>>, vector<2x128xf32>,
    } else {
    }
    %c0 = arith.constant 0 : index
    %c0_1 = arith.constant 0 : index
    %c0_2 = arith.constant 0 : index
    %3 = vector.load %arg2[%c0, %c0_1, %c0_2] : memref<1x128x128xf32, #tpu.memory_space<vmem>>, vector<1x128x128xf32>
    %4 = vector.shape_cast %3 : vector<1x128x128xf32> to vector<128x128xf32>
    %cst = arith.constant dense<0.000000e+00> : vector<128xf32>
    %5 = vector.multi_reduction <add>, %4, %cst [0] : vector<128x128xf32> to vector<128xf32>
    %6 = vector.shape_cast %5 : vector<128xf32> to vector<1x128xf32>
    %7 = arith.mulf %4, %4 : vector<128x128xf32>
    %cst_3 = arith.constant dense<0.000000e+00> : vector<128xf32>
    %8 = vector.multi_reduction <add>, %7, %cst_3 [0] : vector<128x128xf32> to vector<128xf32>
    %9 = vector.shape_cast %8 : vector<128xf32> to vector<1x128xf32>
    %c0_4 = arith.constant 0 : index
    %c0_5 = arith.constant 0 : index
    %10 = vector.load %arg6[%c0_4, %c0_5] : memref<2x128xf32, #tpu.memory_space<vmem>>, vector<2x128xf32>
    %11 = tpu.concatenate %6, %9 in 0 : vector<1x128xf32>, vector<1x128xf32> -> vector<2x128xf32>
    %12 = arith.addf %10, %11 : vector<2x128xf32>
    %c0_6 = arith.constant 0 : index
    %c0_7 = arith.constant 0 : index
    %13 = vector.load %arg6[%c0_6, %c0_7] : memref<2x128xf32, #tpu.memory_space<vmem>>, vector<2x128xf32>
    tpu.vector_store %arg6[%c0_6, %c0_7], %12 {strides = array<i32>} : memref<2x128xf32, #tpu.memory_space<vmem>>, vector<2x128xf32>,
    %c0_i32_8 = arith.constant 0 : i32
    %14 = arith.cmpi eq, %arg1, %c0_i32_8 : i32
    %15 = arith.extui %14 : i1 to i32
    %c0_i32_9 = arith.constant 0 : i32
    %16 = arith.cmpi ne, %15, %c0_i32_9 : i32
    scf.if %16 {
      %c0_10 = arith.constant 0 : index
      %c0_11 = arith.constant 0 : index
      %17 = vector.load %arg6[%c0_10, %c0_11] : memref<2x128xf32, #tpu.memory_space<vmem>>, vector<2x128xf32>
      %c0_12 = arith.constant 0 : index
      %c0_13 = arith.constant 0 : index
      %18 = vector.load %arg4[%c0_12, %c0_13] : memref<128x32xf32, #tpu.memory_space<vmem>>, vector<128x32xf32>
      %cst_14 = arith.constant dense<0.000000e+00> : vector<2x32xf32>
      %19 = tpu.matmul %17, %18, %cst_14 {dimension_numbers = #tpu.dot_dimension_numbers<[1], [0], [0], [1], [0, 0, 1, 1], [], []>} : vector<2x128xf32>, vector<128x32xf32>, vector<2x32xf32> -> vector<2x32xf32>
      %cst_15 = arith.constant 7.812500e-03 : f32
      %20 = vector.broadcast %cst_15 : f32 to vector<2x32xf32>
      %21 = arith.mulf %19, %20 : vector<2x32xf32>
      %22 = vector.extract_strided_slice %21 {offsets = [0, 0], sizes = [1, 32], strides = [1, 1]} : vector<2x32xf32> to vector<1x32xf32>
      %23 = vector.extract_strided_slice %21 {offsets = [1, 0], sizes = [1, 32], strides = [1, 1]} : vector<2x32xf32> to vector<1x32xf32>
      %24 = arith.mulf %22, %22 : vector<1x32xf32>
      %25 = arith.subf %23, %24 : vector<1x32xf32>
      %cst_16 = arith.constant 9.99999997E-7 : f32
      %26 = vector.broadcast %cst_16 : f32 to vector<1x32xf32>
      %27 = arith.addf %25, %26 : vector<1x32xf32>
      %28 = math.rsqrt %27 : vector<1x32xf32>
      %cst_17 = arith.constant 0.000000e+00 : f32
      %29 = vector.broadcast %cst_17 : f32 to vector<1x32xf32>
      %30 = arith.subf %29, %22 : vector<1x32xf32>
      %31 = arith.mulf %30, %28 : vector<1x32xf32>
      %32 = tpu.concatenate %28, %31 in 0 : vector<1x32xf32>, vector<1x32xf32> -> vector<2x32xf32>
      %c0_18 = arith.constant 0 : index
      %c0_19 = arith.constant 0 : index
      %33 = vector.load %arg3[%c0_18, %c0_19] : memref<32x128xf32, #tpu.memory_space<vmem>>, vector<32x128xf32>
      %cst_20 = arith.constant dense<0.000000e+00> : vector<2x128xf32>
      %34 = tpu.matmul %32, %33, %cst_20 {dimension_numbers = #tpu.dot_dimension_numbers<[1], [0], [0], [1], [0, 0, 1, 1], [], []>} : vector<2x32xf32>, vector<32x128xf32>, vector<2x128xf32> -> vector<2x128xf32>
      %c0_21 = arith.constant 0 : index
      %c0_22 = arith.constant 0 : index
      %c0_23 = arith.constant 0 : index
      %35 = vector.load %arg5[%c0_21, %c0_22, %c0_23] : memref<1x2x128xf32, #tpu.memory_space<vmem>>, vector<1x2x128xf32>
      %36 = vector.shape_cast %35 : vector<1x2x128xf32> to vector<2x128xf32>
      %37 = vector.shape_cast %34 : vector<2x128xf32> to vector<1x2x128xf32>
      tpu.vector_store %arg5[%c0_21, %c0_22, %c0_23], %37 {strides = array<i32>} : memref<1x2x128xf32, #tpu.memory_space<vmem>>, vector<1x2x128xf32>,
    } else {
    }
    return
  }
  func.func @transform_0(%arg0: i32, %arg1: i32) -> (i32, i32, i32) {
    %c0_i32 = arith.constant 0 : i32
    %c0_i32_0 = arith.constant 0 : i32
    return %arg0, %arg1, %c0_i32 : i32, i32, i32
  }
  func.func @transform_1(%arg0: i32, %arg1: i32) -> (i32, i32) {
    %c0_i32 = arith.constant 0 : i32
    %c0_i32_0 = arith.constant 0 : i32
    %c0_i32_1 = arith.constant 0 : i32
    return %c0_i32, %c0_i32_0 : i32, i32
  }
  func.func @transform_2(%arg0: i32, %arg1: i32) -> (i32, i32) {
    %c0_i32 = arith.constant 0 : i32
    %c0_i32_0 = arith.constant 0 : i32
    %c0_i32_1 = arith.constant 0 : i32
    return %c0_i32, %c0_i32_0 : i32, i32
  }
  func.func @transform_3(%arg0: i32, %arg1: i32) -> (i32, i32, i32) {
    %c0_i32 = arith.constant 0 : i32
    %c0_i32_0 = arith.constant 0 : i32
    %c0_i32_1 = arith.constant 0 : i32
    return %arg0, %c0_i32, %c0_i32_0 : i32, i32, i32
  }
}

</mosaic_0001>

<bundles_post_ra>
// kernel: tpu_custom_call.1
= control target key start
LH: loop header
LB: loop body
LE: loop exit
PB: predicated region body
PF: predicated region fallthrough
CT: control target
= control target key end

     0   :  { %8 = vsyncpa [#allocation4], 0  ;;  %s905_s0 = inlined_call_operand.hbm [shape: f32[2,128,128], index: 0, kind: input, shape index: {}]   ;;  %s906_s1 = inlined_call_operand.vmem [shape: f32[32,128], index: 1, kind: input, shape index: {}]   ;;  %s907_s2 = inlined_call_operand.vmem [shape: f32[128,32], index: 2, kind: input, shape index: {}]   ;;  %s908_s3 = inlined_call_operand.hbm [shape: f32[2,2,128], index: 3, kind: output, shape index: {}]  }
   0x1   :  { %10 = vsyncpa [#allocation4 + $0x1], 0 }
   0x2   :  { %11 = vsyncpa [#allocation5], 0 }
   0x3   :  { %13 = vsyncpa [#allocation5 + $0x1], 0  ;;  %s704_s12 = smov 0   ;;  %s706_s13 = smov 0  }
   0x4   :  { %s708_s14 = smov 0   ;;  %s710_s15 = smov 0  }
   0x5   :  { %s712_s16 = smov 0   ;;  %s714_s17 = smov 0  }
   0x6 LB: > { %s484_s18 = sadd.s32 4294967295, %s679_s17   ;;  %s485_s19 = sadd.s32 4294967294, %s679_s17   ;;  %s679_s17 = sphi %s714_s17, %s19_s17   ;;  %s675_s16 = sphi %s712_s16, %s917_s16   ;;  %s671_s15 = sphi %s710_s15, %s916_s15   ;;  %s667_s14 = sphi %s708_s14, %s915_s14   ;;  %s663_s13 = sphi %s706_s13, %s914_s13   ;;  %s659_s12 = sphi %s704_s12, %s913_s12  }
   0x7   : > { %s31_s20 = sadd.s32 1, %s675_s16  ;;  %s40_s21 = sadd.s32 1, %s667_s14 }
   0x8   : > { %p33_p0 = scmp.ge.s32.totalorder %s31_s20, 2  ;;  %p47_p1 = scmp.ne.s32.totalorder %s667_s14, %s663_s13 }
   0x9   : > { %p48_p2 = scmp.eq.s32.totalorder %s679_s17, 0  ;;  %p53_p3 = scmp.ne.s32.totalorder %s663_s13, %s659_s12 }
   0xa   : > { %s919_s20 = smov (%p33_p0, %s31_s20), 0  ;;  %p54_p5 = scmp.eq.s32.totalorder %s484_s18, 0 }
   0xb   : > { %p745_p4 = por %p48_p2, %p47_p1  ;;  %s35_s23 = ssub.s32 %s675_s16, %s919_s20 }
   0xc   : > { %p119_p6 = scmp.eq.s32.totalorder %s484_s18, 1  ;;  %p38_p7 = scmp.eq.s32.totalorder %s35_s23, 0 }
   0xd   : > { %p751_p8 = por %p54_p5, %p53_p3  ;;  %p125_p10 = scmp.eq.s32.totalorder %s485_s19, 1 }
   0xe   : > { %p755_p9 = por %p119_p6, %p47_p1  ;;  %p487_p12 = scmp.ge.s32.totalorder %s679_s17, 2 }
   0xf   : > { %s760_s26 = scalar_select %p38_p7, %s667_s14, %s40_s21  }
  0x10   : > { %p762_p11 = por %p125_p10, %p53_p3  ;;  %p512_p13 = scmp.lt.s32.totalorder %s679_s17, 2 }
  0x11   : > { %s151_s28 = sand.u32 1, %s667_s14   ;;  %s499_s30 = sshll.u32 %s675_s16, 7 }
  0x12   : > { %s488_s29 = sshll.u32 %s151_s28, 7  ;;  %s162_s6 = scalar_lea.hbm %s905_s0, %s499_s30 }
  0x13   : > { %s155_s7 = scalar_lea.vmem [#allocation3], %s488_s29  ;;  %s163_s9 = sshll.u32 %s162_s6, 4  ;;  %s164_s9 = int_to_ptr.hbm [resolvable:$true] %s163_s9 }
  0x14   : > { %s165_s8 = sshll.u32 %s155_s7, 4  ;;  %p505_p0 = pnand %p512_p13, %p745_p4  ;;  %s166_s8 = int_to_ptr.vmem [resolvable:$true] %s165_s8 }
  0x15   : > { %p491_p1 = scmp.ge.s32.totalorder %s679_s17, 1  ;;  %s152_s10 = scalar_lea.sflag [#allocation4], %s151_s28 }
  0x16   : > { %s681_s11 = smov 128   ;;  %s682_s18 = smov 8  }
  0x17   : > { %507 = dma.hbm_to_vmem [thread:$0]  (!%p505_p0), %s164_s9, 2048, %s166_s8, %s152_s10, %s681_s11, %s681_s11, %s682_s18  }
  0x18   : > { %p173_p2 = scmp.lt.s32.totalorder %s679_s17, 3 }
  0x1a   : > { %p174_p3 = pnand %p491_p1, %p173_p2 }
  0x1b   : > { %s778_s19 = sand.u32 (!%p174_p3), 1, %s663_s13  }
  0x1c   : > { %177 = sbr.rel (%p174_p3) target bundleno = 382 (0x17e), region = 32  ;;  %s492_s21 = sshll.u32 (!%p174_p3), %s778_s19, 7 }
  0x1d   : > { %s180_s23 = scalar_lea.sflag (!%p174_p3), [#allocation4], %s778_s19  ;;  %s782_s29 = scalar_lea.vmem (!%p174_p3), [#allocation3], %s492_s21 }
  0x21   : > { %650 = dma.done.wait (%p751_p8), %s180_s23, 2048  }
  0x22   : > { %652 = vsyncadd (%p751_p8), %s180_s23, 4294965248  ;;  %v311_v0 = vld [vmem:[%s907_s2 + $0x78] sm:$0xff]  ;;  %v310_v1 = vld [vmem:[%s907_s2 + $0x70] sm:$0xff]  ;;  %v683_v2 = vmov 0.0   ;;  %vm288_vm0 = vcmask 1040384   ;;  %vm362_vm4 = vcmask 261120  }
  0x23   : > { %212 = vst [vmem:[#allocation2] sm:$0x3] %v683_v2  ;;  %312 = vmatpush.msra.mxu0 %v311_v0  ;;  %v309_v3 = vld [vmem:[%s907_s2 + $0x68] sm:$0xff]  ;;  %v308_v4 = vld [vmem:[%s907_s2 + $0x60] sm:$0xff]  ;;  %v307_v7 = vld [vmem:[%s907_s2 + $0x58] sm:$0xff]  ;;  %s493_s9 = sshll.u32 %s778_s19, 1 }
  0x24   : > { %v213_v5 = vld [vmem:[%s782_s29] sm:$0xff]  ;;  %v214_v6 = vld [vmem:[%s782_s29 + $0x8] sm:$0xff]  ;;  %v215_v8 = vld [vmem:[%s782_s29 + $0x10] sm:$0xff]  ;;  %s496_s10 = sshll.u32 %s671_s15, 1  ;;  %s206_s23 = scalar_lea.vmem [#allocation6], %s493_s9 }
  0x25   : > { %313 = vmatpush.msra.mxu0 %v310_v1  ;;  %v216_v9 = vld [vmem:[%s782_s29 + $0x18] sm:$0xff]  ;;  %v229_v10 = vadd.f32 %v214_v6, %v213_v5  ;;  %v250_v11 = vmul.f32 %v213_v5, %v213_v5  ;;  %v251_v12 = vmul.f32 %v214_v6, %v214_v6  ;;  %v252_v13 = vmul.f32 %v215_v8, %v215_v8  ;;  %v306_v14 = vld [vmem:[%s907_s2 + $0x50] sm:$0xff]  ;;  %v217_v15 = vld [vmem:[%s782_s29 + $0x20] sm:$0xff]  ;;  %s398_s21 = scalar_lea.hbm %s908_s3, %s496_s10  ;;  %s400_s22 = sshll.u32 %s206_s23, 4  ;;  %s401_s22 = int_to_ptr.vmem [resolvable:$true] %s400_s22 }
  0x26   : > { %v253_v17 = vmul.f32 %v216_v9, %v216_v9  ;;  %v305_v19 = vld [vmem:[%s907_s2 + $0x48] sm:$0xff]  ;;  %v254_v22 = vmul.f32 %v217_v15, %v217_v15  ;;  %v304_v24 = vld [vmem:[%s907_s2 + $0x40] sm:$0xff]  ;;  %v219_v25 = vld [vmem:[%s782_s29 + $0x30] sm:$0xff]  ;;  %s402_s28 = sshll.u32 %s398_s21, 4  ;;  %s617_s6 = scalar_lea.hbm %s908_s3, 4  ;;  %s403_s28 = int_to_ptr.hbm [resolvable:$true] %s402_s28 }
  0x27   : > { %314 = vmatpush.msra.mxu0 %v309_v3  ;;  %v230_v16 = vadd.f32 %v229_v10, %v215_v8  ;;  %v266_v18 = vadd.f32 %v251_v12, %v250_v11  ;;  %v218_v20 = vld [vmem:[%s782_s29 + $0x28] sm:$0xff]  ;;  %v303_v29 = vld [vmem:[%s907_s2 + $0x38] sm:$0xff]  ;;  %v256_v32 = vmul.f32 %v219_v25, %v219_v25  ;;  %v221_v35 = vld [vmem:[%s782_s29 + $0x40] sm:$0xff]  ;;  %s611_s30 = sshra.s32 %s403_s28, 4  ;;  %s612_s30 = int_to_ptr.hbm [resolvable:$true] %s611_s30 }
  0x28   : > { %v255_v27 = vmul.f32 %v218_v20, %v218_v20  ;;  %v220_v30 = vld [vmem:[%s782_s29 + $0x38] sm:$0xff]  ;;  %v302_v34 = vld [vmem:[%s907_s2 + $0x30] sm:$0xff]  ;;  %v301_v39 = vld [vmem:[%s907_s2 + $0x28] sm:$0xff]  ;;  %v258_v42 = vmul.f32 %v221_v35, %v221_v35  ;;  %s613_s4 = scalar_lea.hbm %s612_s30, 2  ;;  %p618_p7 = scmp.lt.s32.totalorder %s612_s30, %s908_s3 }
  0x29   : > { %315 = vmatpush.msra.mxu0 %v308_v4  ;;  %v231_v21 = vadd.f32 %v230_v16, %v216_v9  ;;  %v267_v23 = vadd.f32 %v266_v18, %v252_v13  ;;  %v257_v37 = vmul.f32 %v220_v30, %v220_v30  ;;  %v222_v40 = vld [vmem:[%s782_s29 + $0x48] sm:$0xff]  ;;  %v300_v44 = vld [vmem:[%s907_s2 + $0x20] sm:$0xff]  ;;  %v223_v45 = vld [vmem:[%s782_s29 + $0x50] sm:$0xff]  ;;  %p614_p4 = scmp.ne.s32.totalorder %s612_s30, %s613_s4  ;;  %p619_p8 = scmp.lt.s32.totalorder %s617_s6, %s613_s4 }
  0x2a   : > { %v259_v47 = vmul.f32 %v222_v40, %v222_v40  ;;  %v299_v49 = vld [vmem:[%s907_s2 + $0x18] sm:$0xff]  ;;  %v260_v52 = vmul.f32 %v223_v45, %v223_v45  ;;  %v298_v54 = vld [vmem:[%s907_s2 + $0x10] sm:$0xff]  ;;  %v225_v55 = vld [vmem:[%s782_s29 + $0x60] sm:$0xff] }
  0x2b   : > { %316 = vmatpush.msra.mxu0 %v307_v7  ;;  %v232_v26 = vadd.f32 %v231_v21, %v217_v15  ;;  %v268_v28 = vadd.f32 %v267_v23, %v253_v17  ;;  %v224_v50 = vld [vmem:[%s782_s29 + $0x58] sm:$0xff]  ;;  %v297_v59 = vld [vmem:[%s907_s2 + $0x8] sm:$0xff]  ;;  %v262_v62 = vmul.f32 %v225_v55, %v225_v55  ;;  %v227_v1 = vld [vmem:[%s782_s29 + $0x70] sm:$0xff]  ;;  %p615_p5 = pnand %p614_p4, %p755_p9  ;;  %p620_p10 = por %p619_p8, %p618_p7 }
  0x2c   : > { %v261_v57 = vmul.f32 %v224_v50, %v224_v50  ;;  %v226_v60 = vld [vmem:[%s782_s29 + $0x68] sm:$0xff]  ;;  %v296_v0 = vld [vmem:[%s907_s2] sm:$0xff]  ;;  %v264_v7 = vmul.f32 %v227_v1, %v227_v1 }
  0x2d   : > { %317 = vmatpush.msra.mxu0 %v306_v14  ;;  %v233_v31 = vadd.f32 %v232_v26, %v218_v20  ;;  %v269_v33 = vadd.f32 %v268_v28, %v254_v22  ;;  %v263_v3 = vmul.f32 %v226_v60, %v226_v60  ;;  %v228_v5 = vld [vmem:[%s782_s29 + $0x78] sm:$0xff]  ;;  %s388_s29 = scalar_lea.sflag [#allocation5], %s778_s19  ;;  %p616_p6 = pneg %p615_p5 }
  0x2e   : > { %v265_v10 = vmul.f32 %v228_v5, %v228_v5 }
  0x2f   : > { %318 = vmatpush.msra.mxu0 %v305_v19  ;;  %v234_v36 = vadd.f32 %v233_v31, %v219_v25  ;;  %v270_v38 = vadd.f32 %v269_v33, %v255_v27  ;;  %v287_v27 = vld [vmem:[#allocation2] sm:$0x3]  ;;  %v361_v31 = vld [vmem:[%s906_s1 + $0x18] sm:$0xff]  ;;  %v359_v33 = vld [vmem:[%s906_s1 + $0x8] sm:$0xff]  ;;  %p621_p13 = pnand %p620_p10, %p616_p6 }
  0x30   : > { %378 = vmatpush.msra.mxu1 %v361_v31 }
  0x31   : > { %319 = vmatpush.msra.mxu0 %v304_v24  ;;  %v235_v41 = vadd.f32 %v234_v36, %v220_v30  ;;  %v271_v43 = vadd.f32 %v270_v38, %v256_v32  ;;  %v360_v32 = vld [vmem:[%s906_s1 + $0x10] sm:$0xff] }
  0x32   : > { %379 = vmatpush.msra.mxu1 %v360_v32 }
  0x33   : > { %320 = vmatpush.msra.mxu0 %v303_v29  ;;  %v236_v46 = vadd.f32 %v235_v41, %v221_v35  ;;  %v272_v48 = vadd.f32 %v271_v43, %v257_v37  ;;  %v358_v35 = vld [vmem:[%s906_s1] sm:$0xff] }
  0x34   : > { %380 = vmatpush.msra.mxu1 %v359_v33 }
  0x35   : > { %321 = vmatpush.msra.mxu0 %v302_v34  ;;  %v237_v51 = vadd.f32 %v236_v46, %v222_v40  ;;  %v273_v53 = vadd.f32 %v272_v48, %v258_v42 }
  0x36   : > { %381 = vmatpush.msra.mxu1 %v358_v35 }
  0x37   : > { %322 = vmatpush.msra.mxu0 %v301_v39  ;;  %v238_v56 = vadd.f32 %v237_v51, %v223_v45  ;;  %v274_v58 = vadd.f32 %v273_v53, %v259_v47 }
  0x39   : > { %323 = vmatpush.msra.mxu0 %v300_v44  ;;  %v239_v61 = vadd.f32 %v238_v56, %v224_v50  ;;  %v275_v63 = vadd.f32 %v274_v58, %v260_v52 }
  0x3b   : > { %324 = vmatpush.msra.mxu0 %v299_v49  ;;  %v240_v2 = vadd.f32 %v239_v61, %v225_v55  ;;  %v276_v4 = vadd.f32 %v275_v63, %v261_v57 }
  0x3d   : > { %325 = vmatpush.msra.mxu0 %v298_v54  ;;  %v241_v6 = vadd.f32 %v240_v2, %v226_v60  ;;  %v277_v8 = vadd.f32 %v276_v4, %v262_v62 }
  0x3f   : > { %326 = vmatpush.msra.mxu0 %v297_v59  ;;  %v242_v9 = vadd.f32 %v241_v6, %v227_v1  ;;  %v278_v11 = vadd.f32 %v277_v8, %v263_v3 }
  0x41   : > { %327 = vmatpush.msra.mxu0 %v296_v0  ;;  %v243_v12 = vadd.f32 %v242_v9, %v228_v5  ;;  %v279_v13 = vadd.f32 %v278_v11, %v264_v7 }
  0x43   : > { %v244_v14 = vrot.slane %v243_v12, 4  ;;  %v280_v15 = vadd.f32 %v279_v13, %v265_v10 }
  0x45   : > { %v245_v16 = vadd.f32 %v244_v14, %v243_v12  ;;  %v281_v17 = vrot.slane %v280_v15, 4 }
  0x47   : > { %v246_v18 = vrot.slane %v245_v16, 2  ;;  %v282_v19 = vadd.f32 %v281_v17, %v280_v15 }
  0x49   : > { %v247_v20 = vadd.f32 %v246_v18, %v245_v16  ;;  %v283_v21 = vrot.slane %v282_v19, 2 }
  0x4b   : > { %v248_v22 = vrot.slane %v247_v20, 1  ;;  %v284_v23 = vadd.f32 %v283_v21, %v282_v19 }
  0x4d   : > { %v249_v24 = vadd.f32 %v248_v22, %v247_v20  ;;  %v285_v25 = vrot.slane %v284_v23, 1 }
  0x4f   : > { %v286_v26 = vadd.f32 %v285_v25, %v284_v23 }
  0x51   : > { %v289_v28 = vsel %vm288_vm0, %v249_v24, %v286_v26 }
  0x52   : > { %v290_v29 = vadd.f32 %v289_v28, %v287_v27 }
  0x54   : > { %291 = vst [vmem:[#allocation2] sm:$0x3] %v290_v29 }
  0x5b   : > { %v295_v30 = vld [vmem:[#allocation2] sm:$0x3] }
  0x5c   : > { %328 = vmatmul.f32.vlgmr.msra.gmra.mxu0 %v295_v30 }
  0xd9   : > { %v329_v34 = vpop.f32.mrf.mxu0 }
  0xda   : > { %v332_v36 = vmul.f32 0.0078125, %v329_v34 }
  0xdc   : > { %v333_v37 = vmul.f32 %v332_v36, %v332_v36  ;;  %v349_v48 = vsub.f32 0.0, %v332_v36 }
  0xde   : > { %v335_v38 = vrot.slane %v333_v37, 7 }
  0xe0   : > { %v337_v39 = vsub.f32 %v332_v36, %v335_v38 }
  0xe2   : > { %v338_v40 = vadd.f32 1e-06, %v337_v39 }
  0xe4   : > { %565 = vrsqrt.f32 %v338_v40  ;;  %vm345_vm2 = vweird.f32 %v338_v40 }
  0xea   : > { %v566_v41 = vpop.eup %565 }
  0xeb   : > { %v340_v42 = vmul.f32 %v566_v41, %v338_v40  ;;  %vm346_vm1 = vweird.f32 %v566_v41 }
  0xec   : > { %vm347_vm3 = vmor %vm345_vm2, %vm346_vm1 }
  0xed   : > { %v341_v43 = vmul.f32 %v566_v41, %v340_v42 }
  0xef   : > { %v342_v44 = vmul.f32 0.5, %v341_v43 }
  0xf1   : > { %v343_v45 = vsub.f32 1.5, %v342_v44 }
  0xf3   : > { %v344_v46 = vmul.f32 %v566_v41, %v343_v45 }
  0xf5   : > { %v348_v47 = vsel %vm347_vm3, %v566_v41, %v344_v46 }
  0xf6   : > { %v351_v49 = vrot.slane %v348_v47, 1 }
  0xf8   : > { %v353_v50 = vmul.f32 %v351_v49, %v349_v48 }
  0xfa   : > { %v355_v51 = vrot.slane %v353_v50, 7 }
  0xfc   : > { %v357_v52 = vsel %vm288_vm0, %v351_v49, %v355_v51 }
  0xfd   : > { %494 = vmatmul.msk.f32.vlgmr.msra.gmra.mxu1 %vm362_vm4, %v357_v52 }
 0x17a   : > { %v383_v53 = vpop.f32.mrf.mxu1 }
 0x17b   : > { %386 = vst [vmem:[%s206_s23] sm:$0x3] %v383_v53 }
 0x17c   : > { %624 = shalt.err (!%p621_p13)
}
 0x17d   : > { %502 = dma.vmem_to_hbm [thread:$0]  (%p755_p9), %s401_s22, 32, %s403_s28, %s388_s29  }
 0x17e PF: > { %s414_s19 = sand.u32 1, %s659_s12   ;;  %p509_p0 = pnand %p487_p12, %p762_p11 }
 0x17f   : > { %s415_s8 = scalar_lea.sflag [#allocation5], %s414_s19 }
 0x180   : > { %p510_p1 = pneg %p509_p0 }
 0x182   : > { %654 = dma.done.wait (%p510_p1), %s415_s8, 32  }
 0x183   : > { %656 = vsyncadd (%p510_p1), %s415_s8, 4294967264  ;;  %s19_s17 = sadd.s32 1, %s679_s17   ;;  %s913_s12 = smov %s663_s13 }
 0x184   : > { %p16_p2 = scmp.ge.s32.totalorder %s19_s17, 4   ;;  %s914_s13 = smov %s667_s14 }
 0x185   : > { %s915_s14 = smov %s760_s26  ;;  %s916_s15 = smov %s675_s16 }
 0x186   : > { %s917_s16 = smov %s919_s20  ;;  %18 = sbr.rel (!%p16_p2) target bundleno = 6 (0x6), region = 85 }
 0x18b   :  { %421 = vsyncpa [#allocation4], 1 }
 0x18c   :  { %423 = vsyncpa [#allocation4 + $0x1], 1 }
 0x18d   :  { %424 = vsyncpa [#allocation5], 1 }
 0x18e   :  { %426 = vsyncpa [#allocation5 + $0x1], 1 }

</bundles_post_ra>
